<compile_context>
chip_gen: v7x
topology: tpu7x:2x2x1
jax: 0.10.0
libtpu: 0.0.40
codegen_flags: <defaults>
</compile_context>

<pallas_src>
import jax
import jax.numpy as jnp
from jax.experimental import pallas as pl
from jax.experimental.pallas import tpu as pltpu


_LANES = 512            # lane-dense last dim (multiple of 128)
_TILE_BYTES = 2 << 20   # ~2 MiB per x tile; in+out double-buffered ~= 8 MiB VMEM


def _cdiv(a: int, b: int) -> int:
    return (a + b - 1) // b


def _round_up(a: int, m: int) -> int:
    return _cdiv(a, m) * m


def _choose_tm(rows: int, itemsize: int) -> int:
    """Pick tile rows: ~2 MiB tiles sized in bytes, sublane-packed per dtype,
    with >= 2 grid steps for mid-size inputs (v7x megacore) where possible."""
    sublane = max(8, 32 // itemsize)                  # f32:8, bf16:16, int8/fp8:32
    tm_max = max(sublane, (_TILE_BYTES // (_LANES * itemsize)) // sublane * sublane)
    if rows <= sublane:
        return rows                                   # full-extent block, no overhang
    if rows >= 2 * tm_max:
        return tm_max
    tm = _round_up(_cdiv(rows, 2), sublane)           # aim for ~2 tiles (both v7x TCs)
    tm = max(tm, min(256, tm_max))                    # keep DMAs reasonably large
    tm = min(tm, tm_max, _round_up(rows, sublane))    # never bigger than the slab
    return tm


def _affine_kernel(w_ref, b_ref, x_ref, o_ref):
    # w_ref/b_ref: (1,1) f32 scalars in SMEM; x_ref/o_ref: (tm, _LANES) VMEM tiles.
    w = w_ref[0, 0]
    b = b_ref[0, 0]
    o_ref[...] = (x_ref[...].astype(jnp.float32) * w + b).astype(o_ref.dtype)


def linear_regression_custom(x: jax.Array, weights: jax.Array, bias: jax.Array) -> jax.Array:
    """y = weights * x + bias, scalar weights/bias broadcast over all of x (any shape)."""
    orig_shape = x.shape
    n = x.size

    w_arr = jnp.asarray(weights)
    b_arr = jnp.asarray(bias)
    # Torch-style promotion: float32 params promote bf16/int inputs to float32.
    out_dtype = jnp.result_type(x.dtype, w_arr.dtype, b_arr.dtype)

    if n == 0:
        return jnp.zeros(orig_shape, out_dtype)

    # Scalar params as (1,1) f32 for SMEM residency; compute done in f32.
    w = w_arr.astype(jnp.float32).reshape(1, 1)
    b = b_arr.astype(jnp.float32).reshape(1, 1)

    itemsize = jnp.dtype(x.dtype).itemsize

    # Lane-dense 2-D slab. Fast path: no pad / no slice when already aligned.
    if n % _LANES == 0:
        rows = n // _LANES
        x2d = x.reshape(rows, _LANES)
        padded = False
    else:
        rows = _cdiv(n, _LANES)
        pad = rows * _LANES - n              # < 512 elements of tail padding
        x2d = jnp.pad(jnp.ravel(x), (0, pad)).reshape(rows, _LANES)
        padded = True

    tm = _choose_tm(rows, itemsize)
    grid = (_cdiv(rows, tm),)                # partial final tile handled by Pallas

    y2d = pl.pallas_call(
        _affine_kernel,
        out_shape=jax.ShapeDtypeStruct((rows, _LANES), out_dtype),
        grid=grid,
        in_specs=[
            pl.BlockSpec(memory_space=pltpu.SMEM),         # weight scalar
            pl.BlockSpec(memory_space=pltpu.SMEM),         # bias scalar
            pl.BlockSpec((tm, _LANES), lambda i: (i, 0)),  # x row-tile
        ],
        out_specs=pl.BlockSpec((tm, _LANES), lambda i: (i, 0)),
        compiler_params=pltpu.CompilerParams(
            dimension_semantics=("parallel",),
        ),
        cost_estimate=pl.CostEstimate(
            flops=2 * n,
            transcendentals=0,
            bytes_accessed=n * itemsize + n * jnp.dtype(out_dtype).itemsize,
        ),
    )(w, b, x2d)

    if padded:
        return y2d.reshape(-1)[:n].reshape(orig_shape)
    return y2d.reshape(orig_shape)


if __name__ == "__main__":
    key = jax.random.PRNGKey(0)
    kx, kw, kb, kx2 = jax.random.split(key, 4)

    # Deterministic parameter init mirroring torch.randn(1) shapes.
    weights = jax.random.normal(kw, (1,), dtype=jnp.float32)
    bias = jax.random.normal(kb, (1,), dtype=jnp.float32)

    # Aligned fast path (no pad / no slice): 8*128 elements = 2 lane-dense rows.
    x = jax.random.normal(kx, (8, 128), dtype=jnp.float32)
    y = jax.block_until_ready(linear_regression_custom(x, weights, bias))
    y_ref = weights * x + bias
    assert y.shape == x.shape and y.dtype == y_ref.dtype
    assert jnp.allclose(y, y_ref, atol=1e-6, rtol=1e-6)

    # Unaligned path (tail pad + partial tile) for robustness.
    x2 = jax.random.normal(kx2, (3, 100), dtype=jnp.float32)
    y2 = jax.block_until_ready(linear_regression_custom(x2, weights, bias))
    assert jnp.allclose(y2, weights * x2 + bias, atol=1e-6, rtol=1e-6)

    print("KERNEL_OK")
</pallas_src>

<mosaic_0001>
module attributes {stable_mosaic.version = 11 : i64} {
  func.func @_affine_kernel(%arg0: i32, %arg1: memref<1x1xf32, #tpu.memory_space<smem>>, %arg2: memref<1x1xf32, #tpu.memory_space<smem>>, %arg3: memref<2x512xf32, #tpu.memory_space<vmem>>, %arg4: memref<2x512xf32, #tpu.memory_space<vmem>>) attributes {dimension_semantics = [#tpu.dimension_semantics<parallel>], iteration_bounds = array<i64: 1>, scalar_prefetch = 0 : i64, scratch_operands = 0 : i64, tpu.core_type = #tpu.core_type<tc>, window_params = [{transform_indices = @transform_0, window_bounds = array<i64: 1, 1>}, {transform_indices = @transform_1, window_bounds = array<i64: 1, 1>}, {transform_indices = @transform_2, window_bounds = array<i64: 2, 512>}, {transform_indices = @transform_3, window_bounds = array<i64: 2, 512>}]} {
    %c0 = arith.constant 0 : index
    %c0_0 = arith.constant 0 : index
    %0 = memref.load %arg1[%c0, %c0_0] : memref<1x1xf32, #tpu.memory_space<smem>>
    %c0_1 = arith.constant 0 : index
    %c0_2 = arith.constant 0 : index
    %1 = memref.load %arg2[%c0_1, %c0_2] : memref<1x1xf32, #tpu.memory_space<smem>>
    %c0_3 = arith.constant 0 : index
    %c0_4 = arith.constant 0 : index
    %2 = vector.load %arg3[%c0_3, %c0_4] : memref<2x512xf32, #tpu.memory_space<vmem>>, vector<2x512xf32>
    %3 = vector.broadcast %0 : f32 to vector<2x512xf32>
    %4 = arith.mulf %2, %3 : vector<2x512xf32>
    %5 = vector.broadcast %1 : f32 to vector<2x512xf32>
    %6 = arith.addf %4, %5 : vector<2x512xf32>
    %c0_5 = arith.constant 0 : index
    %c0_6 = arith.constant 0 : index
    %7 = vector.load %arg4[%c0_5, %c0_6] : memref<2x512xf32, #tpu.memory_space<vmem>>, vector<2x512xf32>
    tpu.vector_store %arg4[%c0_5, %c0_6], %6 {strides = array<i32>} : memref<2x512xf32, #tpu.memory_space<vmem>>, vector<2x512xf32>,
    return
  }
  func.func @transform_0(%arg0: i32) -> (i32, i32) {
    %c0_i32 = arith.constant 0 : i32
    %c0_i32_0 = arith.constant 0 : i32
    %c0_i32_1 = arith.constant 0 : i32
    return %c0_i32, %c0_i32_0 : i32, i32
  }
  func.func @transform_1(%arg0: i32) -> (i32, i32) {
    %c0_i32 = arith.constant 0 : i32
    %c0_i32_0 = arith.constant 0 : i32
    %c0_i32_1 = arith.constant 0 : i32
    return %c0_i32, %c0_i32_0 : i32, i32
  }
  func.func @transform_2(%arg0: i32) -> (i32, i32) {
    %c0_i32 = arith.constant 0 : i32
    %c0_i32_0 = arith.constant 0 : i32
    return %arg0, %c0_i32 : i32, i32
  }
  func.func @transform_3(%arg0: i32) -> (i32, i32) {
    %c0_i32 = arith.constant 0 : i32
    %c0_i32_0 = arith.constant 0 : i32
    return %arg0, %c0_i32 : i32, i32
  }
}

</mosaic_0001>

<bundles_post_ra>
// kernel: tpu_custom_call.1
= control target key start
LH: loop header
LB: loop body
LE: loop exit
PB: predicated region body
PF: predicated region fallthrough
CT: control target
= control target key end

     0   :  { %10 = vsyncpa [#allocation5], 0  ;;  %s154_s0 = inlined_call_operand.<no memory space> [shape: f32[1,1], index: 0, kind: input, shape index: {}]   ;;  %s155_s1 = inlined_call_operand.<no memory space> [shape: f32[1,1], index: 1, kind: input, shape index: {}]   ;;  %s156_s2 = inlined_call_operand.hbm [shape: f32[2,512], index: 2, kind: input, shape index: {}]   ;;  %s157_s3 = inlined_call_operand.hbm [shape: f32[2,512], index: 3, kind: output, shape index: {}]  }
   0x1   :  { %11 = vsyncpa [#allocation6], 0  ;;  %s102_s12 = smov [#allocation4]   ;;  %s54_s16 = scalar_lea.hbm %s156_s2, 128 }
   0x2   :  { %s22_s13 = sshll.u32 %s102_s12, 4  ;;  %p55_p0 = scmp.ne.s32.totalorder %s156_s2, %s54_s16  ;;  %s23_s13 = int_to_ptr.vmem [resolvable:$true] %s22_s13 }
   0x3   :  { %p58_p1 = scmp.lt.u32.totalorder %s54_s16, %s156_s2 }
   0x5   :  { %p60_p2 = pnand %p58_p1, %p55_p0 }
   0x7   :  { %63 = shalt.err (!%p60_p2)
}
   0x8   :  { %s64_s21 = scalar_lea.vmem %s23_s13, 128  ;;  %p69_p4 = scmp.lt.s32.totalorder %s23_s13, %s23_s13 }
   0x9   :  { %p65_p3 = scmp.ne.s32.totalorder %s23_s13, %s64_s21  ;;  %p70_p5 = scmp.lt.s32.totalorder %s64_s21, %s64_s21 }
   0xb   :  { %p71_p6 = por %p70_p5, %p69_p4 }
   0xd   :  { %p72_p7 = pnand %p71_p6, %p65_p3 }
   0xf   :  { %75 = shalt.err (!%p72_p7)
}
  0x10   :  { %25 = dma.hbm_to_vmem [thread:$0]  %s156_s2, 128, %s23_s13, [#allocation5]  }
  0x11   :  { %98 = dma.done.wait [#allocation5], 128  }
  0x12   :  { %99 = vsyncadd [#allocation5], 4294967168  ;;  %v32_v0 = vstv %s154_s0  ;;  %v31_v1 = vld [vmem:[#allocation4] sm:$0xff]  ;;  %v34_v2 = vstv %s155_s1  ;;  %s103_s28 = smov [#allocation7]  }
  0x13   :  { %s43_s29 = sshll.u32 %s103_s28, 4  ;;  %v33_v3 = vmul.f32 %v32_v0, %v31_v1  ;;  %s44_s29 = int_to_ptr.vmem [resolvable:$true] %s43_s29 }
  0x14   :  { %s76_s30 = scalar_lea.vmem %s44_s29, 128  ;;  %p81_p9 = scmp.lt.s32.totalorder %s44_s29, %s44_s29 }
  0x15   :  { %v35_v4 = vadd.f32 %v34_v2, %v33_v3  ;;  %p77_p8 = scmp.ne.s32.totalorder %s44_s29, %s76_s30  ;;  %p82_p10 = scmp.lt.s32.totalorder %s76_s30, %s76_s30 }
  0x17   :  { %36 = vst [vmem:[#allocation7] sm:$0xff] %v35_v4  ;;  %p83_p11 = por %p82_p10, %p81_p9 }
  0x19   :  { %p84_p12 = pnand %p83_p11, %p77_p8 }
  0x1b   :  { %87 = shalt.err (!%p84_p12)
}
  0x1c   :  { %s88_s4 = scalar_lea.hbm %s157_s3, 128 }
  0x1d   :  { %p89_p13 = scmp.ne.s32.totalorder %s157_s3, %s88_s4  ;;  %p92_p0 = scmp.lt.u32.totalorder %s88_s4, %s157_s3 }
  0x1f   :  { %p94_p1 = pnand %p92_p0, %p89_p13 }
  0x21   :  { %97 = shalt.err (!%p94_p1)
}
  0x22   :  { %46 = dma.vmem_to_hbm [thread:$0]  %s44_s29, 128, %s157_s3, [#allocation6]  }
  0x23   :  { %100 = dma.done.wait [#allocation6], 128  }
  0x24   :  { %101 = vsyncadd [#allocation6], 4294967168 }
  0x25   :  { %50 = vsyncpa [#allocation5], 1 }
  0x26   :  { %51 = vsyncpa [#allocation6], 1 }

</bundles_post_ra>
